<compile_context>
chip_gen: v7x
topology: tpu7x:2x2x1
jax: 0.10.0
libtpu: 0.0.40
codegen_flags: <defaults>
</compile_context>

<pallas_src>
import jax
import jax.numpy as jnp
from jax.experimental import pallas as pl
from jax.experimental.pallas import tpu as pltpu

_LANE = 128


def _round_up(x, m):
    return (x + m - 1) // m * m


def _projection_kernel(x_ref, w1_ref, b1_ref, w2_ref, o_ref):
    # hidden = x @ W1 + b1 : MXU matmul with f32 accumulation, f32 bias add.
    h = jnp.dot(x_ref[...], w1_ref[...], preferred_element_type=jnp.float32)
    h = h + b1_ref[...].astype(jnp.float32)
    # Precision policy: hidden is accumulated and biased in f32, then cast to
    # the second weight's dtype for the second MXU pass (standard mixed
    # precision; exact when weights are f32).
    o = jnp.dot(h.astype(w2_ref.dtype), w2_ref[...],
                preferred_element_type=jnp.float32)
    o_ref[...] = o.astype(o_ref.dtype)


def projection_forward(x, w1, b1, w2, *, tm=128, compute_dtype=None,
                       vmem_limit_bytes=None):
    """Fused Linear(+bias) -> Linear(no bias) forward.

    x:  (seq, batch, input_size)
    w1: (nhid, input_size)    -- PyTorch Linear layout
    b1: (nhid,)
    w2: (output_size, nhid)   -- PyTorch Linear layout (no bias)
    returns (seq, batch, output_size), dtype of x.
    """
    seq, batch, input_size = x.shape
    nhid = w1.shape[0]
    output_size = w2.shape[0]
    M = seq * batch

    if compute_dtype is None:
        compute_dtype = x.dtype
    out_dtype = x.dtype

    # ---- glue: flatten, pre-transpose, zero-pad to lane-dense shapes --------
    K = _round_up(input_size, _LANE)    # contraction dim of matmul 1
    H = _round_up(nhid, _LANE)          # hidden dim
    N = _round_up(output_size, _LANE)   # output dim (lane-dense store)
    Mp = _round_up(M, tm)               # padded token rows (tail handling)

    x2d = x.reshape(M, input_size).astype(compute_dtype)
    x2d = jnp.pad(x2d, ((0, Mp - M), (0, K - input_size)))

    w1_t = jnp.pad(w1.T.astype(compute_dtype),
                   ((0, K - input_size), (0, H - nhid)))           # (K, H)
    b1_p = jnp.pad(b1.astype(compute_dtype), (0, H - nhid)).reshape(1, H)
    w2_t = jnp.pad(w2.T.astype(compute_dtype),
                   ((0, H - nhid), (0, N - output_size)))          # (H, N)

    grid = (Mp // tm,)

    # Advisory cost estimate so XLA schedules the custom call sensibly.
    itemsize = jnp.dtype(compute_dtype).itemsize
    cost = pl.CostEstimate(
        flops=2 * Mp * K * H + 2 * Mp * H * N,
        transcendentals=0,
        bytes_accessed=(Mp * K + K * H + H + H * N) * itemsize
                       + Mp * N * jnp.dtype(out_dtype).itemsize,
    )

    # VMEM budget: x / out tiles double-buffered, weights resident (constant
    # index_map). Only raise the scoped limit if the estimate needs it.
    est_vmem = (2 * tm * (K + N) * itemsize          # pipelined x / out tiles
                + 2 * (K * H + H + H * N) * itemsize  # weights (<=2 buffers)
                + tm * H * 4)                         # f32 hidden temp
    compiler_kwargs = dict(dimension_semantics=("parallel",))
    if vmem_limit_bytes is None and est_vmem > (30 << 20):
        vmem_limit_bytes = min(int(est_vmem * 3 // 2), 60 << 20)
    if vmem_limit_bytes is not None:
        compiler_kwargs["vmem_limit_bytes"] = vmem_limit_bytes

    out2d = pl.pallas_call(
        _projection_kernel,
        out_shape=jax.ShapeDtypeStruct((Mp, N), out_dtype),
        grid_spec=pltpu.PrefetchScalarGridSpec(
            num_scalar_prefetch=0,
            grid=grid,
            in_specs=[
                pl.BlockSpec((tm, K), lambda i: (i, 0)),
                # Grid-invariant weights / bias: constant index_map -> resident
                # across grid steps (no re-DMA per step).
                pl.BlockSpec((K, H), lambda i: (0, 0)),
                pl.BlockSpec((1, H), lambda i: (0, 0)),
                pl.BlockSpec((H, N), lambda i: (0, 0)),
            ],
            out_specs=pl.BlockSpec((tm, N), lambda i: (i, 0)),
        ),
        compiler_params=pltpu.CompilerParams(**compiler_kwargs),
        cost_estimate=cost,
    )(x2d, w1_t, b1_p, w2_t)

    return out2d[:M, :output_size].reshape(seq, batch, output_size)


def init_params(key, input_size, nhid, output_size, initrange=0.1):
    """Deterministic synthetic init mirroring the module's parameter shapes."""
    k1, k2, k3 = jax.random.split(key, 3)
    # linear1.weight.data.uniform_(-initrange, initrange), shape (nhid, input_size)
    w1 = jax.random.uniform(k1, (nhid, input_size), jnp.float32,
                            -initrange, initrange)
    # linear1.bias: default PyTorch init U(-1/sqrt(fan_in), 1/sqrt(fan_in))
    bound = 1.0 / (input_size ** 0.5)
    b1 = jax.random.uniform(k2, (nhid,), jnp.float32, -bound, bound)
    # linear2 (no bias), shape (output_size, nhid)
    w2 = jax.random.uniform(k3, (output_size, nhid), jnp.float32, -0.1, 0.1)
    return w1, b1, w2


if __name__ == "__main__":
    # Small shapes consistent with the module's forward:
    # projection_input: (seq, batch, input_size)
    seq, batch = 8, 2
    input_size, nhid, output_size = 32, 16, 64

    key = jax.random.PRNGKey(0)
    kx, kp = jax.random.split(key)
    x = jax.random.normal(kx, (seq, batch, input_size), jnp.float32)
    w1, b1, w2 = init_params(kp, input_size, nhid, output_size)

    # Pure-JAX reference (dropout = identity at inference).
    x2d = x.reshape(seq * batch, input_size)
    ref = ((x2d @ w1.T + b1) @ w2.T).reshape(seq, batch, output_size)

    # f32 path (exact semantics of the PyTorch module at inference).
    out = projection_forward(x, w1, b1, w2)
    out = jax.block_until_ready(out)
    assert out.shape == (seq, batch, output_size)
    assert jnp.allclose(out, ref, atol=1e-4, rtol=1e-4), "f32 mismatch"

    # bf16 compute path (v6e/v7x MXU-friendly); looser tolerance vs f32 ref.
    out_bf16 = projection_forward(x, w1, b1, w2, compute_dtype=jnp.bfloat16)
    out_bf16 = jax.block_until_ready(out_bf16)
    assert out_bf16.shape == (seq, batch, output_size)
    assert bool(jnp.all(jnp.isfinite(out_bf16)))
    assert jnp.allclose(out_bf16, ref, atol=3e-2, rtol=1e-1), "bf16 mismatch"

    print("KERNEL_OK")
</pallas_src>

<mosaic_0001>
module attributes {stable_mosaic.version = 11 : i64} {
  func.func @_projection_kernel(%arg0: i32, %arg1: memref<128x128xf32, #tpu.memory_space<vmem>>, %arg2: memref<128x128xf32, #tpu.memory_space<vmem>>, %arg3: memref<1x128xf32, #tpu.memory_space<vmem>>, %arg4: memref<128x128xf32, #tpu.memory_space<vmem>>, %arg5: memref<128x128xf32, #tpu.memory_space<vmem>>) attributes {dimension_semantics = [#tpu.dimension_semantics<parallel>], iteration_bounds = array<i64: 1>, scalar_prefetch = 0 : i64, scratch_operands = 0 : i64, tpu.core_type = #tpu.core_type<tc>, window_params = [{transform_indices = @transform_0, window_bounds = array<i64: 128, 128>}, {pipeline_mode = #tpu.pipeline_mode<synchronous>, transform_indices = @transform_1, window_bounds = array<i64: 128, 128>}, {pipeline_mode = #tpu.pipeline_mode<synchronous>, transform_indices = @transform_2, window_bounds = array<i64: 1, 128>}, {pipeline_mode = #tpu.pipeline_mode<synchronous>, transform_indices = @transform_3, window_bounds = array<i64: 128, 128>}, {transform_indices = @transform_4, window_bounds = array<i64: 128, 128>}]} {
    %c0 = arith.constant 0 : index
    %c0_0 = arith.constant 0 : index
    %0 = vector.load %arg1[%c0, %c0_0] : memref<128x128xf32, #tpu.memory_space<vmem>>, vector<128x128xf32>
    %c0_1 = arith.constant 0 : index
    %c0_2 = arith.constant 0 : index
    %1 = vector.load %arg2[%c0_1, %c0_2] : memref<128x128xf32, #tpu.memory_space<vmem>>, vector<128x128xf32>
    %cst = arith.constant dense<0.000000e+00> : vector<128x128xf32>
    %2 = tpu.matmul %0, %1, %cst {dimension_numbers = #tpu.dot_dimension_numbers<[1], [0], [0], [1], [0, 0, 1, 1], [], []>} : vector<128x128xf32>, vector<128x128xf32>, vector<128x128xf32> -> vector<128x128xf32>
    %c0_3 = arith.constant 0 : index
    %c0_4 = arith.constant 0 : index
    %3 = vector.load %arg3[%c0_3, %c0_4] : memref<1x128xf32, #tpu.memory_space<vmem>>, vector<1x128xf32>
    %4 = vector.broadcast %3 : vector<1x128xf32> to vector<128x128xf32>
    %5 = arith.addf %2, %4 : vector<128x128xf32>
    %c0_5 = arith.constant 0 : index
    %c0_6 = arith.constant 0 : index
    %6 = vector.load %arg4[%c0_5, %c0_6] : memref<128x128xf32, #tpu.memory_space<vmem>>, vector<128x128xf32>
    %cst_7 = arith.constant dense<0.000000e+00> : vector<128x128xf32>
    %7 = tpu.matmul %5, %6, %cst_7 {dimension_numbers = #tpu.dot_dimension_numbers<[1], [0], [0], [1], [0, 0, 1, 1], [], []>} : vector<128x128xf32>, vector<128x128xf32>, vector<128x128xf32> -> vector<128x128xf32>
    %c0_8 = arith.constant 0 : index
    %c0_9 = arith.constant 0 : index
    %8 = vector.load %arg5[%c0_8, %c0_9] : memref<128x128xf32, #tpu.memory_space<vmem>>, vector<128x128xf32>
    tpu.vector_store %arg5[%c0_8, %c0_9], %7 {strides = array<i32>} : memref<128x128xf32, #tpu.memory_space<vmem>>, vector<128x128xf32>,
    return
  }
  func.func @transform_0(%arg0: i32) -> (i32, i32) {
    %c0_i32 = arith.constant 0 : i32
    %c0_i32_0 = arith.constant 0 : i32
    return %arg0, %c0_i32 : i32, i32
  }
  func.func @transform_1(%arg0: i32) -> (i32, i32) {
    %c0_i32 = arith.constant 0 : i32
    %c0_i32_0 = arith.constant 0 : i32
    %c0_i32_1 = arith.constant 0 : i32
    return %c0_i32, %c0_i32_0 : i32, i32
  }
  func.func @transform_2(%arg0: i32) -> (i32, i32) {
    %c0_i32 = arith.constant 0 : i32
    %c0_i32_0 = arith.constant 0 : i32
    %c0_i32_1 = arith.constant 0 : i32
    return %c0_i32, %c0_i32_0 : i32, i32
  }
  func.func @transform_3(%arg0: i32) -> (i32, i32) {
    %c0_i32 = arith.constant 0 : i32
    %c0_i32_0 = arith.constant 0 : i32
    %c0_i32_1 = arith.constant 0 : i32
    return %c0_i32, %c0_i32_0 : i32, i32
  }
  func.func @transform_4(%arg0: i32) -> (i32, i32) {
    %c0_i32 = arith.constant 0 : i32
    %c0_i32_0 = arith.constant 0 : i32
    return %arg0, %c0_i32 : i32, i32
  }
}

</mosaic_0001>

<bundles_post_ra>
// kernel: tpu_custom_call.1
= control target key start
LH: loop header
LB: loop body
LE: loop exit
PB: predicated region body
PF: predicated region fallthrough
CT: control target
= control target key end

     0   :  { %9 = vsyncpa [#allocation3], 0  ;;  %s880_s0 = inlined_call_operand.hbm [shape: f32[128,128], index: 0, kind: input, shape index: {}]   ;;  %s881_s1 = inlined_call_operand.hbm [shape: f32[128,128], index: 1, kind: input, shape index: {}]   ;;  %s882_s2 = inlined_call_operand.vmem [shape: f32[1,128], index: 2, kind: input, shape index: {}]   ;;  %s883_s3 = inlined_call_operand.hbm [shape: f32[128,128], index: 3, kind: input, shape index: {}]   ;;  %s884_s4 = inlined_call_operand.hbm [shape: f32[128,128], index: 4, kind: output, shape index: {}]  }
   0x1   :  { %10 = vsyncpa [#allocation6], 0 }
   0x2   :  { %11 = vsyncpa [#allocation4], 0  ;;  %s779_s15 = smov [#allocation5]   ;;  %s780_s17 = smov [#allocation2]  }
   0x3   :  { %s29_s16 = sshll.u32 %s779_s15, 4  ;;  %s17_s18 = sshll.u32 %s780_s17, 4  ;;  %s30_s16 = int_to_ptr.vmem [resolvable:$true] %s29_s16  ;;  %s810_s18 = int_to_ptr.vmem [resolvable:$true] %s17_s18 }
   0x4   :  { %s685_s21 = scalar_lea.hbm %s881_s1, 2048 }
   0x5   :  { %p686_p0 = scmp.ne.s32.totalorder %s881_s1, %s685_s21  ;;  %p689_p1 = scmp.lt.u32.totalorder %s685_s21, %s881_s1 }
   0x7   :  { %p691_p2 = pnand %p689_p1, %p686_p0 }
   0x9   :  { %694 = shalt.err (!%p691_p2)
}
   0xa   :  { %s695_s26 = scalar_lea.vmem %s30_s16, 2048  ;;  %p700_p4 = scmp.lt.s32.totalorder %s30_s16, %s30_s16 }
   0xb   :  { %p696_p3 = scmp.ne.s32.totalorder %s30_s16, %s695_s26  ;;  %p701_p5 = scmp.lt.s32.totalorder %s695_s26, %s695_s26 }
   0xd   :  { %p702_p6 = por %p701_p5, %p700_p4 }
   0xf   :  { %p703_p7 = pnand %p702_p6, %p696_p3 }
  0x11   :  { %706 = shalt.err (!%p703_p7)
}
  0x12   :  { %s781_s27 = smov 128   ;;  %s782_s28 = smov 8  }
  0x13   :  { %35 = dma.hbm_to_vmem [thread:$0]  %s881_s1, 2048, %s30_s16, [#allocation6], %s781_s27, %s781_s27, %s782_s28  }
  0x14   :  { %s707_s7 = scalar_lea.hbm %s880_s0, 2048 }
  0x15   :  { %p708_p8 = scmp.ne.s32.totalorder %s880_s0, %s707_s7  ;;  %p711_p9 = scmp.lt.u32.totalorder %s707_s7, %s880_s0 }
  0x17   :  { %p713_p10 = pnand %p711_p9, %p708_p8 }
  0x19   :  { %716 = shalt.err (!%p713_p10)
}
  0x1a   :  { %s717_s12 = scalar_lea.vmem %s810_s18, 2048  ;;  %p722_p12 = scmp.lt.s32.totalorder %s810_s18, %s810_s18 }
  0x1b   :  { %p718_p11 = scmp.ne.s32.totalorder %s810_s18, %s717_s12  ;;  %p723_p13 = scmp.lt.s32.totalorder %s717_s12, %s717_s12 }
  0x1d   :  { %p724_p0 = por %p723_p13, %p722_p12 }
  0x1f   :  { %p725_p1 = pnand %p724_p0, %p718_p11 }
  0x21   :  { %728 = shalt.err (!%p725_p1)
}
  0x22   :  { %23 = dma.hbm_to_vmem [thread:$0]  %s880_s0, 2048, %s810_s18, [#allocation3], %s781_s27, %s781_s27, %s782_s28  }
  0x23   :  { %s783_s14 = smov [#allocation7]   ;;  %s729_s19 = scalar_lea.hbm %s883_s3, 2048 }
  0x24   :  { %s43_s15 = sshll.u32 %s783_s14, 4  ;;  %p730_p2 = scmp.ne.s32.totalorder %s883_s3, %s729_s19  ;;  %s44_s15 = int_to_ptr.vmem [resolvable:$true] %s43_s15 }
  0x25   :  { %p733_p3 = scmp.lt.u32.totalorder %s729_s19, %s883_s3 }
  0x27   :  { %p735_p4 = pnand %p733_p3, %p730_p2 }
  0x29   :  { %738 = shalt.err (!%p735_p4)
}
  0x2a   :  { %s739_s24 = scalar_lea.vmem %s44_s15, 2048  ;;  %p744_p6 = scmp.lt.s32.totalorder %s44_s15, %s44_s15 }
  0x2b   :  { %p740_p5 = scmp.ne.s32.totalorder %s44_s15, %s739_s24  ;;  %p745_p7 = scmp.lt.s32.totalorder %s739_s24, %s739_s24 }
  0x2d   :  { %p746_p8 = por %p745_p7, %p744_p6 }
  0x2f   :  { %p747_p9 = pnand %p746_p8, %p740_p5 }
  0x31   :  { %750 = shalt.err (!%p747_p9)
}
  0x32   :  { %49 = dma.hbm_to_vmem [thread:$0]  %s883_s3, 2048, %s44_s15, [#allocation6], %s781_s27, %s781_s27, %s782_s28  }
  0x33   :  { %773 = dma.done.wait [#allocation3], 2048  }
  0x34   :  { %774 = vsyncadd [#allocation3], 4294965248 }
  0x35   :  { %775 = dma.done.wait [#allocation6], 4096  }
  0x36   :  { %776 = vsyncadd [#allocation6], 4294963200  ;;  %v75_v0 = vld [vmem:[#allocation5] sm:$0xff]  ;;  %v76_v1 = vld [vmem:[#allocation5 + $0x8] sm:$0xff] }
  0x37   :  { %v77_v2 = vld [vmem:[#allocation5 + $0x10] sm:$0xff]  ;;  %v615_v3 = vpack.c.bf16 %v76_v1, %v75_v0  ;;  %v78_v4 = vld [vmem:[#allocation5 + $0x18] sm:$0xff]  ;;  %v79_v6 = vld [vmem:[#allocation5 + $0x20] sm:$0xff] }
  0x38   :  { %v619_v5 = vpack.c.bf16 %v78_v4, %v77_v2  ;;  %v80_v7 = vld [vmem:[#allocation5 + $0x28] sm:$0xff]  ;;  %v59_v9 = vld [vmem:[#allocation2] sm:$0xff]  ;;  %v81_v10 = vld [vmem:[#allocation5 + $0x30] sm:$0xff] }
  0x39   :  { %616 = vmatprep.subr.bf16.mxu0 %v615_v3  ;;  %v623_v8 = vpack.c.bf16 %v80_v7, %v79_v6  ;;  %v82_v11 = vld [vmem:[#allocation5 + $0x38] sm:$0xff]  ;;  %535 = vmatprep.mubr.f32.mxu0 %v59_v9  ;;  %v83_v13 = vld [vmem:[#allocation5 + $0x40] sm:$0xff]  ;;  %v84_v14 = vld [vmem:[#allocation5 + $0x48] sm:$0xff] }
  0x3a   :  { %618 = vmatpush3.bf16.msra.mxu0 %v615_v3  ;;  %v627_v12 = vpack.c.bf16 %v82_v11, %v81_v10  ;;  %v243_v15 = vld [vmem:[#allocation7] sm:$0xff]  ;;  %v244_v16 = vld [vmem:[#allocation7 + $0x8] sm:$0xff]  ;;  %v245_v17 = vld [vmem:[#allocation7 + $0x10] sm:$0xff]  ;;  %v631_v21 = vpack.c.bf16 %v84_v14, %v83_v13 }
  0x3b   :  { %620 = vmatprep.subr.bf16.mxu0 %v619_v5  ;;  %v246_v18 = vld [vmem:[#allocation7 + $0x18] sm:$0xff]  ;;  %v647_v19 = vpack.c.bf16 %v244_v16, %v243_v15  ;;  %v247_v22 = vld [vmem:[#allocation7 + $0x20] sm:$0xff]  ;;  %v248_v23 = vld [vmem:[#allocation7 + $0x28] sm:$0xff] }
  0x3c   :  { %v651_v20 = vpack.c.bf16 %v246_v18, %v245_v17  ;;  %v85_v24 = vld [vmem:[#allocation5 + $0x50] sm:$0xff]  ;;  %v86_v25 = vld [vmem:[#allocation5 + $0x58] sm:$0xff]  ;;  %v655_v26 = vpack.c.bf16 %v248_v23, %v247_v22  ;;  %v87_v30 = vld [vmem:[#allocation5 + $0x60] sm:$0xff] }
  0x3d   :  { %648 = vmatprep.subr.bf16.mxu1 %v647_v19  ;;  %v635_v27 = vpack.c.bf16 %v86_v25, %v85_v24  ;;  %v249_v28 = vld [vmem:[#allocation7 + $0x30] sm:$0xff]  ;;  %v250_v29 = vld [vmem:[#allocation7 + $0x38] sm:$0xff]  ;;  %v88_v31 = vld [vmem:[#allocation5 + $0x68] sm:$0xff] }
  0x3e   :  { %622 = vmatpush3.bf16.msra.mxu0 %v619_v5  ;;  %650 = vmatpush3.bf16.msra.mxu1 %v647_v19  ;;  %v659_v32 = vpack.c.bf16 %v250_v29, %v249_v28  ;;  %v639_v33 = vpack.c.bf16 %v88_v31, %v87_v30  ;;  %v251_v34 = vld [vmem:[#allocation7 + $0x40] sm:$0xff]  ;;  %v252_v35 = vld [vmem:[#allocation7 + $0x48] sm:$0xff]  ;;  %v89_v36 = vld [vmem:[#allocation5 + $0x70] sm:$0xff] }
  0x3f   :  { %624 = vmatprep.subr.bf16.mxu0 %v623_v8  ;;  %652 = vmatprep.subr.bf16.mxu1 %v651_v20  ;;  %v90_v37 = vld [vmem:[#allocation5 + $0x78] sm:$0xff]  ;;  %v663_v38 = vpack.c.bf16 %v252_v35, %v251_v34  ;;  %v253_v40 = vld [vmem:[#allocation7 + $0x50] sm:$0xff]  ;;  %v255_v43 = vld [vmem:[#allocation7 + $0x60] sm:$0xff] }
  0x40   :  { %v643_v39 = vpack.c.bf16 %v90_v37, %v89_v36  ;;  %v254_v41 = vld [vmem:[#allocation7 + $0x58] sm:$0xff]  ;;  %v256_v44 = vld [vmem:[#allocation7 + $0x68] sm:$0xff]  ;;  %v61_v47 = vld [vmem:[#allocation2 + $0x10] sm:$0xff] }
  0x41   :  { %v667_v42 = vpack.c.bf16 %v254_v41, %v253_v40  ;;  %v60_v45 = vld [vmem:[#allocation2 + $0x8] sm:$0xff]  ;;  %v671_v46 = vpack.c.bf16 %v256_v44, %v255_v43  ;;  %v62_v48 = vld [vmem:[#allocation2 + $0x18] sm:$0xff]  ;;  %v63_v49 = vld [vmem:[#allocation2 + $0x20] sm:$0xff] }
  0x42   :  { %626 = vmatpush3.bf16.msra.mxu0 %v623_v8  ;;  %654 = vmatpush3.bf16.msra.mxu1 %v651_v20  ;;  %v64_v50 = vld [vmem:[#allocation2 + $0x28] sm:$0xff]  ;;  %v65_v51 = vld [vmem:[#allocation2 + $0x30] sm:$0xff]  ;;  %v66_v52 = vld [vmem:[#allocation2 + $0x38] sm:$0xff] }
  0x43   :  { %628 = vmatprep.subr.bf16.mxu0 %v627_v12  ;;  %656 = vmatprep.subr.bf16.mxu1 %v655_v26  ;;  %v67_v53 = vld [vmem:[#allocation2 + $0x40] sm:$0xff]  ;;  %v68_v54 = vld [vmem:[#allocation2 + $0x48] sm:$0xff]  ;;  %v69_v55 = vld [vmem:[#allocation2 + $0x50] sm:$0xff] }
  0x44   :  { %v70_v56 = vld [vmem:[#allocation2 + $0x58] sm:$0xff]  ;;  %v71_v57 = vld [vmem:[#allocation2 + $0x60] sm:$0xff]  ;;  %v72_v58 = vld [vmem:[#allocation2 + $0x68] sm:$0xff] }
  0x45   :  { %v73_v59 = vld [vmem:[#allocation2 + $0x70] sm:$0xff]  ;;  %v74_v60 = vld [vmem:[#allocation2 + $0x78] sm:$0xff]  ;;  %v438_v0 = vld [vmem:[%s882_s2] ss:$0 sm:$0xff]  ;;  %s784_s2 = smov [#allocation8]  }
  0x46   :  { %630 = vmatpush3.bf16.msra.mxu0 %v627_v12  ;;  %658 = vmatpush3.bf16.msra.mxu1 %v655_v26  ;;  %v257_v61 = vld [vmem:[#allocation7 + $0x70] sm:$0xff]  ;;  %v258_v62 = vld [vmem:[#allocation7 + $0x78] sm:$0xff]  ;;  %s425_s26 = sshll.u32 %s784_s2, 4  ;;  %s426_s26 = int_to_ptr.vmem [resolvable:$true] %s425_s26 }
  0x47   :  { %632 = vmatprep.subr.bf16.mxu0 %v631_v21  ;;  %660 = vmatprep.subr.bf16.mxu1 %v659_v32  ;;  %v675_v63 = vpack.c.bf16 %v258_v62, %v257_v61  ;;  %s751_s29 = scalar_lea.vmem %s426_s26, 2048  ;;  %p756_p11 = scmp.lt.s32.totalorder %s426_s26, %s426_s26 }
  0x48   :  { %p752_p10 = scmp.ne.s32.totalorder %s426_s26, %s751_s29  ;;  %p757_p12 = scmp.lt.s32.totalorder %s751_s29, %s751_s29 }
  0x4a   :  { %634 = vmatpush3.bf16.msra.mxu0 %v631_v21  ;;  %662 = vmatpush3.bf16.msra.mxu1 %v659_v32  ;;  %p758_p13 = por %p757_p12, %p756_p11 }
  0x4b   :  { %636 = vmatprep.subr.bf16.mxu0 %v635_v27  ;;  %664 = vmatprep.subr.bf16.mxu1 %v663_v38 }
  0x4c   :  { %p759_p0 = pnand %p758_p13, %p752_p10 }
  0x4e   :  { %638 = vmatpush3.bf16.msra.mxu0 %v635_v27  ;;  %666 = vmatpush3.bf16.msra.mxu1 %v663_v38 }
  0x4f   :  { %640 = vmatprep.subr.bf16.mxu0 %v639_v33  ;;  %668 = vmatprep.subr.bf16.mxu1 %v667_v42 }
  0x52   :  { %642 = vmatpush3.bf16.msra.mxu0 %v639_v33  ;;  %670 = vmatpush3.bf16.msra.mxu1 %v667_v42 }
  0x53   :  { %644 = vmatprep.subr.bf16.mxu0 %v643_v39  ;;  %672 = vmatprep.subr.bf16.mxu1 %v671_v46 }
  0x56   :  { %646 = vmatpush3.bf16.msra.mxu0 %v643_v39  ;;  %674 = vmatpush3.bf16.msra.mxu1 %v671_v46 }
  0x57   :  { %676 = vmatprep.subr.bf16.mxu1 %v675_v63 }
  0x59   :  { %536 = vmatmul.mubr.f32.vlgmr.msra.gmra.mrb[0].mxu0 %v60_v45 }
  0x5a   :  { %538 = vmatprep.mubr.f32.mxu0 %v61_v47  ;;  %678 = vmatpush3.bf16.msra.mxu1 %v675_v63 }
  0x5d   :  { %539 = vmatmul.mubr.f32.gmra.mrb[2].mxu0 %v62_v48 }
  0x5e   :  { %541 = vmatprep.mubr.f32.mxu0 %v63_v49 }
  0x61   :  { %542 = vmatmul.mubr.f32.gmra.mrb[4].mxu0 %v64_v50 }
  0x62   :  { %544 = vmatprep.mubr.f32.mxu0 %v65_v51 }
  0x65   :  { %545 = vmatmul.mubr.f32.gmra.mrb[6].mxu0 %v66_v52 }
  0x66   :  { %547 = vmatprep.mubr.f32.mxu0 %v67_v53 }
  0x69   :  { %548 = vmatmul.mubr.f32.gmra.mrb[8].mxu0 %v68_v54 }
  0x6a   :  { %550 = vmatprep.mubr.f32.mxu0 %v69_v55 }
  0x6d   :  { %551 = vmatmul.mubr.f32.gmra.mrb[10].mxu0 %v70_v56 }
  0x6e   :  { %553 = vmatprep.mubr.f32.mxu0 %v71_v57 }
  0x71   :  { %554 = vmatmul.mubr.f32.gmra.mrb[12].mxu0 %v72_v58 }
  0x72   :  { %556 = vmatprep.mubr.f32.mxu0 %v73_v59 }
  0x75   :  { %557 = vmatmul.mubr.f32.gmra.mrb[14].mxu0 %v74_v60 }
 0x12c   :  { %v537_v1 = vpop.f32.mrb[0].mxu0 }
 0x12d   :  { %v164_v2 = vpop.f32.mrb[1].mxu0  ;;  %v170_v4 = vadd.f32 %v537_v1, %v438_v0 }
 0x12e   :  { %v165_v3 = vadd.f32 %v438_v0, %v164_v2 }
 0x130   :  { %v540_v5 = vpop.f32.mrb[2].mxu0  ;;  %591 = vmatprep.mubr.f32.mxu1 %v165_v3 }
 0x131   :  { %v174_v6 = vpop.f32.mrb[3].mxu0  ;;  %592 = vmatmul.mubr.f32.vlgmr.msra.gmra.mrb[0].mxu1 %v170_v4  ;;  %v180_v8 = vadd.f32 %v540_v5, %v438_v0 }
 0x132   :  { %v175_v7 = vadd.f32 %v438_v0, %v174_v6 }
 0x134   :  { %v543_v9 = vpop.f32.mrb[4].mxu0  ;;  %594 = vmatprep.mubr.f32.mxu1 %v175_v7 }
 0x135   :  { %v184_v10 = vpop.f32.mrb[5].mxu0  ;;  %595 = vmatmul.mubr.f32.gmra.mrb[2].mxu1 %v180_v8  ;;  %v190_v12 = vadd.f32 %v543_v9, %v438_v0 }
 0x136   :  { %v185_v11 = vadd.f32 %v438_v0, %v184_v10 }
 0x138   :  { %v546_v13 = vpop.f32.mrb[6].mxu0  ;;  %597 = vmatprep.mubr.f32.mxu1 %v185_v11 }
 0x139   :  { %v194_v14 = vpop.f32.mrb[7].mxu0  ;;  %598 = vmatmul.mubr.f32.gmra.mrb[4].mxu1 %v190_v12  ;;  %v200_v16 = vadd.f32 %v546_v13, %v438_v0 }
 0x13a   :  { %v195_v15 = vadd.f32 %v438_v0, %v194_v14 }
 0x13c   :  { %v549_v17 = vpop.f32.mrb[8].mxu0  ;;  %600 = vmatprep.mubr.f32.mxu1 %v195_v15 }
 0x13d   :  { %v204_v18 = vpop.f32.mrb[9].mxu0  ;;  %601 = vmatmul.mubr.f32.gmra.mrb[6].mxu1 %v200_v16  ;;  %v210_v20 = vadd.f32 %v549_v17, %v438_v0 }
 0x13e   :  { %v205_v19 = vadd.f32 %v438_v0, %v204_v18 }
 0x140   :  { %v552_v21 = vpop.f32.mrb[10].mxu0  ;;  %603 = vmatprep.mubr.f32.mxu1 %v205_v19 }
 0x141   :  { %v214_v22 = vpop.f32.mrb[11].mxu0  ;;  %604 = vmatmul.mubr.f32.gmra.mrb[8].mxu1 %v210_v20  ;;  %v220_v24 = vadd.f32 %v552_v21, %v438_v0 }
 0x142   :  { %v215_v23 = vadd.f32 %v438_v0, %v214_v22 }
 0x144   :  { %v555_v25 = vpop.f32.mrb[12].mxu0  ;;  %606 = vmatprep.mubr.f32.mxu1 %v215_v23 }
 0x145   :  { %v224_v26 = vpop.f32.mrb[13].mxu0  ;;  %607 = vmatmul.mubr.f32.gmra.mrb[10].mxu1 %v220_v24  ;;  %v230_v28 = vadd.f32 %v555_v25, %v438_v0 }
 0x146   :  { %v225_v27 = vadd.f32 %v438_v0, %v224_v26 }
 0x148   :  { %v558_v29 = vpop.f32.mrb[14].mxu0  ;;  %609 = vmatprep.mubr.f32.mxu1 %v225_v27 }
 0x149   :  { %v234_v30 = vpop.f32.mrb[15].mxu0  ;;  %610 = vmatmul.mubr.f32.gmra.mrb[12].mxu1 %v230_v28  ;;  %v240_v32 = vadd.f32 %v558_v29, %v438_v0 }
 0x14a   :  { %v235_v31 = vadd.f32 %v438_v0, %v234_v30 }
 0x14c   :  { %612 = vmatprep.mubr.f32.mxu1 %v235_v31 }
 0x14d   :  { %613 = vmatmul.mubr.f32.gmra.mrb[14].mxu1 %v240_v32 }
 0x204   :  { %v593_v33 = vpop.f32.mrb[0].mxu1 }
 0x205   :  { %405 = vst [vmem:[#allocation8 + $0x8] sm:$0xff] %v593_v33  ;;  %v325_v34 = vpop.f32.mrb[1].mxu1 }
 0x206   :  { %404 = vst [vmem:[#allocation8] sm:$0xff] %v325_v34 }
 0x208   :  { %v596_v35 = vpop.f32.mrb[2].mxu1 }
 0x209   :  { %407 = vst [vmem:[#allocation8 + $0x18] sm:$0xff] %v596_v35  ;;  %v335_v36 = vpop.f32.mrb[3].mxu1 }
 0x20a   :  { %406 = vst [vmem:[#allocation8 + $0x10] sm:$0xff] %v335_v36 }
 0x20c   :  { %v599_v37 = vpop.f32.mrb[4].mxu1 }
 0x20d   :  { %409 = vst [vmem:[#allocation8 + $0x28] sm:$0xff] %v599_v37  ;;  %v345_v38 = vpop.f32.mrb[5].mxu1 }
 0x20e   :  { %408 = vst [vmem:[#allocation8 + $0x20] sm:$0xff] %v345_v38 }
 0x210   :  { %v602_v39 = vpop.f32.mrb[6].mxu1 }
 0x211   :  { %411 = vst [vmem:[#allocation8 + $0x38] sm:$0xff] %v602_v39  ;;  %v355_v40 = vpop.f32.mrb[7].mxu1 }
 0x212   :  { %410 = vst [vmem:[#allocation8 + $0x30] sm:$0xff] %v355_v40 }
 0x214   :  { %v605_v41 = vpop.f32.mrb[8].mxu1 }
 0x215   :  { %413 = vst [vmem:[#allocation8 + $0x48] sm:$0xff] %v605_v41  ;;  %v365_v42 = vpop.f32.mrb[9].mxu1 }
 0x216   :  { %412 = vst [vmem:[#allocation8 + $0x40] sm:$0xff] %v365_v42 }
 0x218   :  { %v608_v43 = vpop.f32.mrb[10].mxu1 }
 0x219   :  { %415 = vst [vmem:[#allocation8 + $0x58] sm:$0xff] %v608_v43  ;;  %v375_v44 = vpop.f32.mrb[11].mxu1 }
 0x21a   :  { %414 = vst [vmem:[#allocation8 + $0x50] sm:$0xff] %v375_v44 }
 0x21c   :  { %v611_v45 = vpop.f32.mrb[12].mxu1 }
 0x21d   :  { %417 = vst [vmem:[#allocation8 + $0x68] sm:$0xff] %v611_v45  ;;  %v385_v46 = vpop.f32.mrb[13].mxu1 }
 0x21e   :  { %416 = vst [vmem:[#allocation8 + $0x60] sm:$0xff] %v385_v46 }
 0x220   :  { %v614_v47 = vpop.f32.mrb[14].mxu1 }
 0x221   :  { %419 = vst [vmem:[#allocation8 + $0x78] sm:$0xff] %v614_v47  ;;  %v395_v48 = vpop.f32.mrb[15].mxu1 }
 0x222   :  { %418 = vst [vmem:[#allocation8 + $0x70] sm:$0xff] %v395_v48 }
 0x223   :  { %762 = shalt.err (!%p759_p0)
}
 0x224   :  { %s763_s6 = scalar_lea.hbm %s884_s4, 2048 }
 0x225   :  { %p764_p1 = scmp.ne.s32.totalorder %s884_s4, %s763_s6  ;;  %p767_p2 = scmp.lt.u32.totalorder %s763_s6, %s884_s4 }
 0x227   :  { %p769_p3 = pnand %p767_p2, %p764_p1 }
 0x229   :  { %772 = shalt.err (!%p769_p3)
}
 0x22a   :  { %431 = dma.vmem_to_hbm [thread:$0]  %s426_s26, 2048, %s884_s4, [#allocation4], %s781_s27, %s781_s27, %s782_s28  }
 0x22b   :  { %777 = dma.done.wait [#allocation4], 2048  }
 0x22c   :  { %778 = vsyncadd [#allocation4], 4294965248 }
 0x22d   :  { %435 = vsyncpa [#allocation3], 1 }
 0x22e   :  { %436 = vsyncpa [#allocation6], 1 }
 0x22f   :  { %437 = vsyncpa [#allocation4], 1 }

</bundles_post_ra>
